<compile_context>
chip_gen: v5e
topology: v5e:2x2
jax: 0.10.0
libtpu: 0.0.40
codegen_flags: <defaults>
</compile_context>

<pallas_src>
import jax
import jax.numpy as jnp
from jax.experimental import pallas as pl
from jax.experimental.pallas import tpu as pltpu


def _round_up(x, m):
    return ((x + m - 1) // m) * m


def _attention_classifier_kernel(x_ref, w1_ref, b1_ref, w2_ref, b2_ref, out_ref):
    # x_ref:  (TN, C_in)              streamed per grid step
    # w1_ref: (C_in, A_pad)           VMEM-resident (constant index_map)
    # b1_ref: (1, A_pad)   f32        VMEM-resident
    # w2_ref: (A_pad, 128) lane-padded, VMEM-resident
    # b2_ref: (1, num_classes) f32    VMEM-resident
    # out_ref:(TN, num_classes)       streamed per grid step (narrow store)
    x = x_ref[...]

    # First matmul on the MXU with f32 accumulation; bias + ReLU in f32 on the
    # VPU (keeps v5e's f32-only VPU happy even when inputs are bf16).
    h = jnp.dot(x, w1_ref[...], preferred_element_type=jnp.float32) + b1_ref[...]
    h = jnp.maximum(h, 0.0)

    # Second matmul against the 128-lane-padded w2 (clean MXU tile), f32 acc.
    y = jnp.dot(h.astype(w2_ref.dtype), w2_ref[...],
                preferred_element_type=jnp.float32)

    # Only the real class columns leave the kernel.
    num_classes = out_ref.shape[-1]
    out_ref[...] = (y[:, :num_classes] + b2_ref[...]).astype(out_ref.dtype)


def prepare_params(w1, b1, w2, b2, *, use_bf16=False):
    """One-time parameter prep (do NOT redo per forward call).

    Pads hidden dim A and the class dim of w2 to 128-lane multiples (exact:
    zeros through ReLU / zero rows of w2 contribute nothing).  Biases stay
    f32; b2 is kept at its true width since the kernel stores a narrow output.
    """
    c_in, a = w1.shape
    num_classes = w2.shape[1]
    a_pad = _round_up(a, 128)
    c_pad = _round_up(num_classes, 128)

    w1p = jnp.zeros((c_in, a_pad), jnp.float32).at[:, :a].set(w1)
    b1p = jnp.zeros((1, a_pad), jnp.float32).at[:, :a].set(jnp.reshape(b1, (1, -1)))
    w2p = jnp.zeros((a_pad, c_pad), jnp.float32).at[:a, :num_classes].set(w2)
    b2p = jnp.reshape(b2, (1, -1)).astype(jnp.float32)

    if use_bf16:
        # Halves x/w HBM traffic; f32 accumulation keeps bias/ReLU exact-ish.
        w1p = w1p.astype(jnp.bfloat16)
        w2p = w2p.astype(jnp.bfloat16)
    return w1p, b1p, w2p, b2p


def attention_classifier_forward(x, params, *, block_n=8192):
    """x: (N, in_channels); params from prepare_params().
    Returns (N, num_classes) f32."""
    w1p, b1p, w2p, b2p = params
    n, c_in = x.shape
    a_pad = w1p.shape[1]
    c_pad = w2p.shape[1]
    num_classes = b2p.shape[1]

    if w1p.dtype == jnp.bfloat16:
        x = x.astype(jnp.bfloat16)

    # Batch tile: multiple of 8, capped at block_n.  No padded HBM copy of x:
    # the grid covers N with cdiv and Pallas masks the ragged last block.
    tn = min(block_n, _round_up(n, 8))
    grid = (pl.cdiv(n, tn),)

    out = pl.pallas_call(
        _attention_classifier_kernel,
        out_shape=jax.ShapeDtypeStruct((n, num_classes), jnp.float32),
        grid=grid,
        in_specs=[
            pl.BlockSpec((tn, c_in), lambda i: (i, 0)),          # x: streamed
            pl.BlockSpec((c_in, a_pad), lambda i: (0, 0)),       # w1: resident
            pl.BlockSpec((1, a_pad), lambda i: (0, 0)),          # b1: resident
            pl.BlockSpec((a_pad, c_pad), lambda i: (0, 0)),      # w2: resident
            pl.BlockSpec((1, num_classes), lambda i: (0, 0)),    # b2: resident
        ],
        out_specs=pl.BlockSpec((tn, num_classes), lambda i: (i, 0)),  # narrow store
        compiler_params=pltpu.CompilerParams(
            # Independent batch tiles -> parallel (2 TCs on v7x).
            dimension_semantics=("parallel",),
            # (TN,128) f32 temporaries + double-buffered x tile fit easily;
            # explicit limit keeps v5e's 16 MiB scoped default from biting.
            vmem_limit_bytes=32 * 1024 * 1024,
        ),
    )(x, w1p, b1p, w2p, b2p)

    return out


def init_params(key, in_channels=32, attention_num=37, num_classes=2):
    """Deterministic init mimicking torch.nn.Linear default (uniform +/- 1/sqrt(fan_in)).
    Weights stored as [in, out] (W.T relative to PyTorch) so the kernel does x @ W."""
    k1, k2, k3, k4 = jax.random.split(key, 4)
    bound1 = 1.0 / jnp.sqrt(in_channels)
    bound2 = 1.0 / jnp.sqrt(attention_num)
    w1 = jax.random.uniform(k1, (in_channels, attention_num), jnp.float32,
                            -bound1, bound1)
    b1 = jax.random.uniform(k2, (attention_num,), jnp.float32, -bound1, bound1)
    w2 = jax.random.uniform(k3, (attention_num, num_classes), jnp.float32,
                            -bound2, bound2)
    b2 = jax.random.uniform(k4, (num_classes,), jnp.float32, -bound2, bound2)
    return w1, b1, w2, b2


def reference_forward(x, w1, b1, w2, b2):
    h = jnp.maximum(x @ w1 + b1, 0.0)
    return h @ w2 + b2


if __name__ == "__main__":
    key = jax.random.PRNGKey(0)
    kx, kp = jax.random.split(key)

    batch = 8
    in_channels = 32
    attention_num = 37
    num_classes = 2

    x = jax.random.normal(kx, (batch, in_channels), jnp.float32)
    w1, b1, w2, b2 = init_params(kp, in_channels, attention_num, num_classes)

    # One-time parameter prep (padding / optional bf16 cast) hoisted out of
    # the forward wrapper.  use_bf16=False here so the f32 1e-5 check holds;
    # set True for large-N deployments.
    params = prepare_params(w1, b1, w2, b2, use_bf16=False)

    out = attention_classifier_forward(x, params)
    out = jax.block_until_ready(out)

    ref = reference_forward(x, w1, b1, w2, b2)
    assert out.shape == (batch, num_classes)
    assert jnp.allclose(out, ref, atol=1e-5, rtol=1e-5), \
        f"max abs err {jnp.max(jnp.abs(out - ref))}"

    print("KERNEL_OK")
</pallas_src>

<mosaic_0001>
module attributes {stable_mosaic.version = 11 : i64} {
  func.func @_attention_classifier_kernel(%arg0: i32, %arg1: memref<8x32xf32, #tpu.memory_space<vmem>>, %arg2: memref<32x128xf32, #tpu.memory_space<vmem>>, %arg3: memref<1x128xf32, #tpu.memory_space<vmem>>, %arg4: memref<128x128xf32, #tpu.memory_space<vmem>>, %arg5: memref<1x2xf32, #tpu.memory_space<vmem>>, %arg6: memref<8x2xf32, #tpu.memory_space<vmem>>) attributes {dimension_semantics = [#tpu.dimension_semantics<parallel>], iteration_bounds = array<i64: 1>, scalar_prefetch = 0 : i64, scratch_operands = 0 : i64, tpu.core_type = #tpu.core_type<tc>, window_params = [{transform_indices = @transform_0, window_bounds = array<i64: 8, 32>}, {pipeline_mode = #tpu.pipeline_mode<synchronous>, transform_indices = @transform_1, window_bounds = array<i64: 32, 128>}, {pipeline_mode = #tpu.pipeline_mode<synchronous>, transform_indices = @transform_2, window_bounds = array<i64: 1, 128>}, {pipeline_mode = #tpu.pipeline_mode<synchronous>, transform_indices = @transform_3, window_bounds = array<i64: 128, 128>}, {pipeline_mode = #tpu.pipeline_mode<synchronous>, transform_indices = @transform_4, window_bounds = array<i64: 1, 2>}, {transform_indices = @transform_5, window_bounds = array<i64: 8, 2>}]} {
    %c0 = arith.constant 0 : index
    %c0_0 = arith.constant 0 : index
    %0 = vector.load %arg1[%c0, %c0_0] : memref<8x32xf32, #tpu.memory_space<vmem>>, vector<8x32xf32>
    %c0_1 = arith.constant 0 : index
    %c0_2 = arith.constant 0 : index
    %1 = vector.load %arg2[%c0_1, %c0_2] : memref<32x128xf32, #tpu.memory_space<vmem>>, vector<32x128xf32>
    %cst = arith.constant dense<0.000000e+00> : vector<8x128xf32>
    %2 = tpu.matmul %0, %1, %cst {dimension_numbers = #tpu.dot_dimension_numbers<[1], [0], [0], [1], [0, 0, 1, 1], [], []>} : vector<8x32xf32>, vector<32x128xf32>, vector<8x128xf32> -> vector<8x128xf32>
    %c0_3 = arith.constant 0 : index
    %c0_4 = arith.constant 0 : index
    %3 = vector.load %arg3[%c0_3, %c0_4] : memref<1x128xf32, #tpu.memory_space<vmem>>, vector<1x128xf32>
    %4 = vector.broadcast %3 : vector<1x128xf32> to vector<8x128xf32>
    %5 = arith.addf %2, %4 : vector<8x128xf32>
    %cst_5 = arith.constant 0.000000e+00 : f32
    %6 = vector.broadcast %cst_5 : f32 to vector<8x128xf32>
    %7 = arith.maximumf %5, %6 : vector<8x128xf32>
    %c0_6 = arith.constant 0 : index
    %c0_7 = arith.constant 0 : index
    %8 = vector.load %arg4[%c0_6, %c0_7] : memref<128x128xf32, #tpu.memory_space<vmem>>, vector<128x128xf32>
    %cst_8 = arith.constant dense<0.000000e+00> : vector<8x128xf32>
    %9 = tpu.matmul %7, %8, %cst_8 {dimension_numbers = #tpu.dot_dimension_numbers<[1], [0], [0], [1], [0, 0, 1, 1], [], []>} : vector<8x128xf32>, vector<128x128xf32>, vector<8x128xf32> -> vector<8x128xf32>
    %10 = vector.extract_strided_slice %9 {offsets = [0, 0], sizes = [8, 2], strides = [1, 1]} : vector<8x128xf32> to vector<8x2xf32>
    %c0_9 = arith.constant 0 : index
    %c0_10 = arith.constant 0 : index
    %11 = vector.load %arg5[%c0_9, %c0_10] : memref<1x2xf32, #tpu.memory_space<vmem>>, vector<1x2xf32>
    %12 = vector.broadcast %11 : vector<1x2xf32> to vector<8x2xf32>
    %13 = arith.addf %10, %12 : vector<8x2xf32>
    %c0_11 = arith.constant 0 : index
    %c0_12 = arith.constant 0 : index
    %14 = vector.load %arg6[%c0_11, %c0_12] : memref<8x2xf32, #tpu.memory_space<vmem>>, vector<8x2xf32>
    tpu.vector_store %arg6[%c0_11, %c0_12], %13 {strides = array<i32>} : memref<8x2xf32, #tpu.memory_space<vmem>>, vector<8x2xf32>,
    return
  }
  func.func @transform_0(%arg0: i32) -> (i32, i32) {
    %c0_i32 = arith.constant 0 : i32
    %c0_i32_0 = arith.constant 0 : i32
    return %arg0, %c0_i32 : i32, i32
  }
  func.func @transform_1(%arg0: i32) -> (i32, i32) {
    %c0_i32 = arith.constant 0 : i32
    %c0_i32_0 = arith.constant 0 : i32
    %c0_i32_1 = arith.constant 0 : i32
    return %c0_i32, %c0_i32_0 : i32, i32
  }
  func.func @transform_2(%arg0: i32) -> (i32, i32) {
    %c0_i32 = arith.constant 0 : i32
    %c0_i32_0 = arith.constant 0 : i32
    %c0_i32_1 = arith.constant 0 : i32
    return %c0_i32, %c0_i32_0 : i32, i32
  }
  func.func @transform_3(%arg0: i32) -> (i32, i32) {
    %c0_i32 = arith.constant 0 : i32
    %c0_i32_0 = arith.constant 0 : i32
    %c0_i32_1 = arith.constant 0 : i32
    return %c0_i32, %c0_i32_0 : i32, i32
  }
  func.func @transform_4(%arg0: i32) -> (i32, i32) {
    %c0_i32 = arith.constant 0 : i32
    %c0_i32_0 = arith.constant 0 : i32
    %c0_i32_1 = arith.constant 0 : i32
    return %c0_i32, %c0_i32_0 : i32, i32
  }
  func.func @transform_5(%arg0: i32) -> (i32, i32) {
    %c0_i32 = arith.constant 0 : i32
    %c0_i32_0 = arith.constant 0 : i32
    return %arg0, %c0_i32 : i32, i32
  }
}

</mosaic_0001>

<bundles_post_ra>
// kernel: tpu_custom_call.1
= control target key start
LH: loop header
LB: loop body
LE: loop exit
PB: predicated region body
PF: predicated region fallthrough
CT: control target
= control target key end

     0   :  { %10 = vsyncpa [#allocation3], 0  ;;  %s285_s0 = inlined_call_operand.hbm [shape: f32[8,32], index: 0, kind: input, shape index: {}]   ;;  %s286_s1 = inlined_call_operand.hbm [shape: f32[32,128], index: 1, kind: input, shape index: {}]   ;;  %s287_s2 = inlined_call_operand.vmem [shape: f32[1,128], index: 2, kind: input, shape index: {}]   ;;  %s288_s3 = inlined_call_operand.hbm [shape: f32[128,128], index: 3, kind: input, shape index: {}]   ;;  %s289_s4 = inlined_call_operand.vmem [shape: f32[1,2], index: 4, kind: input, shape index: {}]   ;;  %s290_s5 = inlined_call_operand.vmem [shape: f32[8,2], index: 5, kind: output, shape index: {}]  }
   0x1   :  { %11 = vsyncpa [#allocation5], 0  ;;  %s27_s20 = sshll.u32 %s286_s1, 4  ;;  %s232_s21 = smov [#allocation4]   ;;  %s28_s20 = int_to_ptr.hbm [resolvable:$true] %s27_s20 }
   0x2   :  { %s29_s22 = sshll.u32 %s232_s21, 4  ;;  %s17_s25 = sshll.u32 %s285_s0, 4  ;;  %s30_s22 = int_to_ptr.vmem [resolvable:$true] %s29_s22  ;;  %s18_s25 = int_to_ptr.hbm [resolvable:$true] %s17_s25 }
   0x3   :  { %s233_s26 = smov 128   ;;  %s234_s27 = smov 8  }
   0x4   :  { %35 = dma.hbm_to_vmem [thread:$0]  %s28_s20, 512, %s30_s22, [#allocation5], %s233_s26, %s233_s26, %s234_s27  }
   0x5   :  { %s235_s28 = smov [#allocation2]   ;;  %s42_s7 = sshll.u32 %s288_s3, 4  ;;  %s43_s7 = int_to_ptr.hbm [resolvable:$true] %s42_s7 }
   0x6   :  { %s19_s29 = sshll.u32 %s235_s28, 4  ;;  %s236_s1 = smov [#allocation6]   ;;  %s20_s29 = int_to_ptr.vmem [resolvable:$true] %s19_s29 }
   0x7   :  { %22 = dma.hbm_to_vmem [thread:$0]  %s18_s25, 128, %s20_s29, [#allocation3]  }
   0x8   :  { %s44_s8 = sshll.u32 %s236_s1, 4  ;;  %s45_s8 = int_to_ptr.vmem [resolvable:$true] %s44_s8 }
   0x9   :  { %50 = dma.hbm_to_vmem [thread:$0]  %s43_s7, 2048, %s45_s8, [#allocation5], %s233_s26, %s233_s26, %s234_s27  }
   0xa   :  { %228 = dma.done.wait [#allocation3], 128  }
   0xb   :  { %229 = vsyncadd [#allocation3], 4294967168 }
   0xc   :  { %230 = dma.done.wait [#allocation5], 2560  }
   0xd   :  { %231 = vsyncadd [#allocation5], 4294964736  ;;  %v69_v0 = vld [vmem:[#allocation4 + $0x18] sm:$0xff]  ;;  %v68_v1 = vld [vmem:[#allocation4 + $0x10] sm:$0xff]  ;;  %vm74_vm0 = vcmask 261120   ;;  %vm140_vm1 = vcmask 15360  }
   0xe   :  { %90 = vmatpush.msra.mxu0 %v69_v0  ;;  %v114_v2 = vld [vmem:[#allocation6 + $0x78] sm:$0xff]  ;;  %v67_v3 = vld [vmem:[#allocation4 + $0x8] sm:$0xff]  ;;  %v113_v4 = vld [vmem:[#allocation6 + $0x70] sm:$0xff] }
   0xf   :  { %115 = vmatpush.msra.mxu1 %v114_v2  ;;  %v112_v5 = vld [vmem:[#allocation6 + $0x68] sm:$0xff]  ;;  %v66_v6 = vld [vmem:[#allocation4] sm:$0xff]  ;;  %v65_v7 = vld [vmem:[#allocation2] sm:$0xff] }
  0x10   :  { %91 = vmatpush.msra.mxu0 %v68_v1  ;;  %v111_v8 = vld [vmem:[#allocation6 + $0x60] sm:$0xff]  ;;  %v110_v9 = vld [vmem:[#allocation6 + $0x58] sm:$0xff]  ;;  %v109_v10 = vld [vmem:[#allocation6 + $0x50] sm:$0xff] }
  0x11   :  { %116 = vmatpush.msra.mxu1 %v113_v4  ;;  %v108_v11 = vld [vmem:[#allocation6 + $0x48] sm:$0xff]  ;;  %v107_v12 = vld [vmem:[#allocation6 + $0x40] sm:$0xff]  ;;  %v106_v13 = vld [vmem:[#allocation6 + $0x38] sm:$0xff] }
  0x12   :  { %92 = vmatpush.msra.mxu0 %v67_v3  ;;  %v105_v14 = vld [vmem:[#allocation6 + $0x30] sm:$0xff]  ;;  %v104_v15 = vld [vmem:[#allocation6 + $0x28] sm:$0xff]  ;;  %v103_v16 = vld [vmem:[#allocation6 + $0x20] sm:$0xff] }
  0x13   :  { %117 = vmatpush.msra.mxu1 %v112_v5  ;;  %v102_v17 = vld [vmem:[#allocation6 + $0x18] sm:$0xff]  ;;  %v101_v18 = vld [vmem:[#allocation6 + $0x10] sm:$0xff]  ;;  %v100_v19 = vld [vmem:[#allocation6 + $0x8] sm:$0xff] }
  0x14   :  { %93 = vmatpush.msra.mxu0 %v66_v6  ;;  %v99_v20 = vld [vmem:[#allocation6] sm:$0xff]  ;;  %v154_v21 = vld [vmem:[%s287_s2] ss:$0 sm:$0xff] }
  0x15   :  { %148 = vmatmul.msk.f32.vlgmr.msra.gmra.mxu0 %vm74_vm0, %v65_v7  ;;  %118 = vmatpush.msra.mxu1 %v111_v8  ;;  %v155_v25 = vld [vmem:[%s289_s4] ss:$0 sm:$0xff] }
  0x17   :  { %119 = vmatpush.msra.mxu1 %v110_v9 }
  0x19   :  { %120 = vmatpush.msra.mxu1 %v109_v10 }
  0x1b   :  { %121 = vmatpush.msra.mxu1 %v108_v11 }
  0x1d   :  { %122 = vmatpush.msra.mxu1 %v107_v12 }
  0x1f   :  { %123 = vmatpush.msra.mxu1 %v106_v13 }
  0x21   :  { %124 = vmatpush.msra.mxu1 %v105_v14 }
  0x23   :  { %125 = vmatpush.msra.mxu1 %v104_v15 }
  0x25   :  { %126 = vmatpush.msra.mxu1 %v103_v16 }
  0x27   :  { %127 = vmatpush.msra.mxu1 %v102_v17 }
  0x29   :  { %128 = vmatpush.msra.mxu1 %v101_v18 }
  0x2b   :  { %129 = vmatpush.msra.mxu1 %v100_v19 }
  0x2d   :  { %130 = vmatpush.msra.mxu1 %v99_v20 }
  0x92   :  { %v95_v22 = vpop.f32.mrf.mxu0 }
  0x93   :  { %v96_v23 = vadd.f32 %v154_v21, %v95_v22 }
  0x95   :  { %v98_v24 = vmax.f32 %v96_v23, 0.0 }
  0x97   :  { %131 = vmatmul.f32.vlgmr.msra.gmra.mxu1 %v98_v24 }
 0x114   :  { %v132_v26 = vpop.f32.mrf.mxu1 }
 0x115   :  { %v139_v27 = vadd.f32 %v155_v25, %v132_v26 }
 0x117   :  { %141 = vst.msk [vmem:[%s290_s5] sm:$0xff] %vm140_vm1, %v139_v27 }
 0x118   :  { %146 = vsyncpa [#allocation3], 1 }
 0x119   :  { %147 = vsyncpa [#allocation5], 1 }

</bundles_post_ra>
